<compile_context>
chip_gen: v5e
topology: v5e:2x2
jax: 0.10.0
libtpu: 0.0.40
codegen_flags: <defaults>
</compile_context>

<pallas_src>
import functools

import jax
import jax.numpy as jnp
from jax.experimental import pallas as pl
from jax.experimental.pallas import tpu as pltpu

HIDDEN = 64     # fc1/fc2 width of the PyTorch module
NE = 128        # extended MXU width: 64 fc1 lanes + 2 residual lanes + 62 zero


def _residual_si_head_kernel(x_ref, w1e_ref, b1e_ref, w2e_ref, b2e_ref,
                             w3e_ref, o_ref):
    """One batch tile of the fused residual MLP head.

    x_ref   : (tile_b, D)   activations (batch on sublanes, features on lanes)
    w1e_ref : (D, 128)      [ fc1.T | +wres | -wres | 0 ]   (wres = w3 @ wp)
    b1e_ref : (1, 128)      [ b1    | +bout | -bout | 0 ]   (bout = b3 + w3@bp)
    w2e_ref : (128, 128)    [[fc2.T, 0], [0, I2], [0, 0]]   identity on lanes 64/65
    b2e_ref : (1, 128)      [ b2    | 0 ]
    w3e_ref : (1, 128)      [ w3    | +1 | -1 | 0 ]
    o_ref   : (1, tile_b)   lane-dense output slab (batch on lanes)
    """
    x = x_ref[...]

    # fc1 (+ the folded input_proj residual riding the same MXU pass).
    # Lane 64 = relu(+r), lane 65 = relu(-r) with r = x@wres + bout, so one
    # uniform ReLU over all 128 lanes is exact: relu(r) - relu(-r) == r.
    h1 = jnp.dot(x, w1e_ref[...], preferred_element_type=jnp.float32) + b1e_ref[...]
    h1 = jnp.maximum(h1, 0.0)

    # fc2 on lanes 0:64; lanes 64/65 pass through an identity sub-block
    # (their values are >= 0, so the uniform ReLU leaves them unchanged).
    h1c = h1.astype(w2e_ref.dtype)          # no-op on the f32 path
    h2 = jnp.dot(h1c, w2e_ref[...], preferred_element_type=jnp.float32) + b2e_ref[...]
    h2 = jnp.maximum(h2, 0.0)

    # fc3 + residual recombination: a single 128-lane VPU multiply + XLU lane
    # reduction (w3e = [w3 | +1 | -1 | 0...]).  MXU stays free for fc1/fc2.
    col = jnp.sum(h2 * w3e_ref[...], axis=-1, keepdims=True)        # (tile_b, 1)

    # Lane-dense store: batch on the 128-wide lane axis -> unmasked vst.
    o_ref[...] = jnp.transpose(col, (1, 0)).astype(o_ref.dtype)     # (1, tile_b)


def _vmem_capacity_bytes():
    """Physical VMEM of the local chip (v5e/v6e: 128 MiB, v7x: 64 MiB)."""
    try:
        info = pltpu.get_tpu_info()
        cap = getattr(info, "vmem_capacity_bytes", None)
        if cap:
            return int(cap)
    except Exception:
        pass
    return 64 << 20     # conservative fallback (v7x physical VMEM)


def _pick_tile_b(B, D, vmem_cap_bytes, itemsize, max_tile=4096):
    """Largest lane-aligned batch tile that fits a per-generation VMEM budget,
    with >= 2 grid steps for large B so v7x's two TensorCores share the work."""
    x_budget = max(2 << 20, vmem_cap_bytes // 4)      # double-buffered x stream
    cap = max(128, min(max_tile, x_budget // max(1, 2 * D * itemsize)))
    if B < 256:
        return B                                      # single full-array block
    half = 128 * pl.cdiv(pl.cdiv(B, 2), 128)          # >= 2 steps -> both v7x TCs
    tile = min(cap, half)
    return max(128, (tile // 128) * 128)


def _vmem_limit_bytes(vmem_cap_bytes, tile_b, D, itemsize):
    x_bytes = 2 * tile_b * D * itemsize               # double-buffered input stream
    out_bytes = 2 * tile_b * 4
    param_bytes = 2 * ((D * NE + NE * NE) * itemsize + 3 * NE * 4)
    interm_bytes = 6 * tile_b * NE * 4                # h1/h2/epilogue headroom
    needed = x_bytes + out_bytes + param_bytes + interm_bytes + (2 << 20)
    return int(min(vmem_cap_bytes - (2 << 20), max(32 << 20, needed)))


def residual_si_head(x, params, *, tile_b=None, use_bf16=False):
    """x: (B, input_dim) float32. Returns (B, 1) float32 (eval-mode forward)."""
    B, D = x.shape
    w1, b1, w2, b2, w3, b3, wp, bp = params
    mm_dtype = jnp.bfloat16 if use_bf16 else jnp.float32
    itemsize = 2 if use_bf16 else 4

    vmem_cap = _vmem_capacity_bytes()
    if tile_b is None:
        tile_b = _pick_tile_b(B, D, vmem_cap, itemsize)
    num_tiles = pl.cdiv(B, tile_b)
    B_pad = num_tiles * tile_b
    if num_tiles > 1 and tile_b % 128 != 0:
        raise ValueError("multi-tile runs need a lane-aligned (multiple-of-128) tile_b")

    # ---- one-time parameter prep (layout plumbing + exact eval-mode fold) ----
    # input_proj folded through fc3:
    #   (x2 + x@wp^T + bp)@w3^T + b3 == x2@w3^T + x@(w3@wp)^T + (b3 + w3@bp)
    wres = (w3 @ wp).reshape(D)                        # (D,)
    bout = (b3 + w3 @ bp).reshape(())                  # scalar
    w1e = jnp.zeros((D, NE), jnp.float32)
    w1e = w1e.at[:, :HIDDEN].set(w1.T)
    w1e = w1e.at[:, HIDDEN].set(wres)
    w1e = w1e.at[:, HIDDEN + 1].set(-wres)
    b1e = jnp.zeros((1, NE), jnp.float32)
    b1e = b1e.at[0, :HIDDEN].set(b1)
    b1e = b1e.at[0, HIDDEN].set(bout)
    b1e = b1e.at[0, HIDDEN + 1].set(-bout)
    w2e = jnp.zeros((NE, NE), jnp.float32)
    w2e = w2e.at[:HIDDEN, :HIDDEN].set(w2.T)
    w2e = w2e.at[HIDDEN, HIDDEN].set(1.0)
    w2e = w2e.at[HIDDEN + 1, HIDDEN + 1].set(1.0)
    b2e = jnp.zeros((1, NE), jnp.float32)
    b2e = b2e.at[0, :HIDDEN].set(b2)
    w3e = jnp.zeros((1, NE), jnp.float32)
    w3e = w3e.at[0, :HIDDEN].set(w3.reshape(HIDDEN))
    w3e = w3e.at[0, HIDDEN].set(1.0)
    w3e = w3e.at[0, HIDDEN + 1].set(-1.0)

    # Optional bf16 MXU path (v6e/v7x): halves the dominant x HBM stream and
    # doubles MXU rate; accumulation and the epilogue stay f32.
    x_in = x.astype(mm_dtype)
    w1e = w1e.astype(mm_dtype)
    w2e = w2e.astype(mm_dtype)

    if B_pad != B:                                     # ragged tail -> zero pad
        x_in = jnp.pad(x_in, ((0, B_pad - B), (0, 0)))

    rep = lambda a: pl.BlockSpec(a.shape, lambda i: (0, 0))   # whole-array, constant
    # NOTE(perf): on v7x with very large D the replicated parameter specs can
    # additionally be single-buffered via pipeline_mode=pl.Buffered(1); omitted
    # here since their footprint is < ~2 MiB even at D=1024.

    param_elems = D * NE + NE * NE + 3 * NE
    cost = pl.CostEstimate(
        flops=2 * B_pad * NE * (D + NE) + 4 * B_pad * NE,
        transcendentals=0,
        bytes_accessed=B_pad * D * itemsize + B_pad * 4 + param_elems * itemsize)

    out_row = pl.pallas_call(
        _residual_si_head_kernel,
        out_shape=jax.ShapeDtypeStruct((1, B_pad), jnp.float32),
        grid_spec=pltpu.PrefetchScalarGridSpec(
            num_scalar_prefetch=0,
            grid=(num_tiles,),
            in_specs=[
                pl.BlockSpec((tile_b, D), lambda i: (i, 0)),      # x batch tile
                rep(w1e), rep(b1e),                               # fc1 ⊕ residual
                rep(w2e), rep(b2e),                               # fc2 ⊕ pass-through
                rep(w3e),                                         # fc3 ⊕ recombine
            ],
            out_specs=pl.BlockSpec((1, tile_b), lambda i: (0, i)),  # lane-dense slab
        ),
        compiler_params=pltpu.CompilerParams(
            dimension_semantics=("parallel",),        # megacore sharding on v7x
            vmem_limit_bytes=_vmem_limit_bytes(vmem_cap, tile_b, D, itemsize),
        ),
        cost_estimate=cost,
    )(x_in, w1e, b1e, w2e, b2e, w3e)

    return out_row[0, :B].reshape(B, 1)


def init_params(input_dim, key):
    """Deterministic synthetic parameters matching nn.Linear shapes/layout."""
    ks = jax.random.split(key, 8)

    def lin(kw, kb, out_f, in_f):
        bound = float(in_f) ** -0.5
        w = jax.random.uniform(kw, (out_f, in_f), jnp.float32, -bound, bound)
        b = jax.random.uniform(kb, (out_f,), jnp.float32, -bound, bound)
        return w, b

    w1, b1 = lin(ks[0], ks[1], HIDDEN, input_dim)   # fc1
    w2, b2 = lin(ks[2], ks[3], HIDDEN, HIDDEN)      # fc2
    w3, b3 = lin(ks[4], ks[5], 1, HIDDEN)           # fc3
    wp, bp = lin(ks[6], ks[7], HIDDEN, input_dim)   # input_proj (input_dim != 64)
    return (w1, b1, w2, b2, w3, b3, wp, bp)


def reference(x, params):
    """Pure-JAX reference in the ORIGINAL (unfolded) formulation."""
    w1, b1, w2, b2, w3, b3, wp, bp = params
    x0 = x @ wp.T + bp
    x1 = jax.nn.relu(x @ w1.T + b1)
    x2 = jax.nn.relu(x1 @ w2.T + b2)
    return (x2 + x0) @ w3.T + b3


if __name__ == "__main__":
    key = jax.random.PRNGKey(0)
    k_x, k_p, k_x2 = jax.random.split(key, 3)

    batch, input_dim = 16, 32          # input_dim != 64 -> input_proj is a Linear
    x = jax.random.normal(k_x, (batch, input_dim), dtype=jnp.float32)
    params = init_params(input_dim, k_p)

    # f32 path: exact parity with the pure-JAX reference.
    fwd = jax.jit(functools.partial(residual_si_head, params=params))
    out = jax.block_until_ready(fwd(x))
    ref = reference(x, params)
    assert out.shape == (batch, 1)
    assert jnp.allclose(out, ref, atol=5e-5, rtol=5e-5), "mismatch vs pure-JAX reference"

    # Ragged multi-tile path (forced small tile): exercises cdiv grid + padding.
    B2 = 300
    x2 = jax.random.normal(k_x2, (B2, input_dim), dtype=jnp.float32)
    out2 = jax.block_until_ready(
        jax.jit(functools.partial(residual_si_head, params=params, tile_b=128))(x2))
    assert out2.shape == (B2, 1)
    assert jnp.allclose(out2, reference(x2, params), atol=5e-5, rtol=5e-5), \
        "mismatch on ragged multi-tile path"

    # Optional bf16 activation/weight path (v6e/v7x win); loose tolerance.
    out_bf = jax.block_until_ready(
        jax.jit(functools.partial(residual_si_head, params=params, use_bf16=True))(x))
    assert out_bf.shape == (batch, 1)
    assert jnp.allclose(out_bf, ref, atol=1e-1, rtol=1e-1), "bf16 path mismatch"

    print("KERNEL_OK")
</pallas_src>

<mosaic_0001>
module attributes {stable_mosaic.version = 11 : i64} {
  func.func @_residual_si_head_kernel(%arg0: i32, %arg1: memref<16x32xf32, #tpu.memory_space<vmem>>, %arg2: memref<32x128xf32, #tpu.memory_space<vmem>>, %arg3: memref<1x128xf32, #tpu.memory_space<vmem>>, %arg4: memref<128x128xf32, #tpu.memory_space<vmem>>, %arg5: memref<1x128xf32, #tpu.memory_space<vmem>>, %arg6: memref<1x128xf32, #tpu.memory_space<vmem>>, %arg7: memref<1x16xf32, #tpu.memory_space<vmem>>) attributes {dimension_semantics = [#tpu.dimension_semantics<parallel>], iteration_bounds = array<i64: 1>, scalar_prefetch = 0 : i64, scratch_operands = 0 : i64, tpu.core_type = #tpu.core_type<tc>, window_params = [{transform_indices = @transform_0, window_bounds = array<i64: 16, 32>}, {pipeline_mode = #tpu.pipeline_mode<synchronous>, transform_indices = @transform_1, window_bounds = array<i64: 32, 128>}, {pipeline_mode = #tpu.pipeline_mode<synchronous>, transform_indices = @transform_2, window_bounds = array<i64: 1, 128>}, {pipeline_mode = #tpu.pipeline_mode<synchronous>, transform_indices = @transform_3, window_bounds = array<i64: 128, 128>}, {pipeline_mode = #tpu.pipeline_mode<synchronous>, transform_indices = @transform_4, window_bounds = array<i64: 1, 128>}, {pipeline_mode = #tpu.pipeline_mode<synchronous>, transform_indices = @transform_5, window_bounds = array<i64: 1, 128>}, {transform_indices = @transform_6, window_bounds = array<i64: 1, 16>}]} {
    %c0 = arith.constant 0 : index
    %c0_0 = arith.constant 0 : index
    %0 = vector.load %arg1[%c0, %c0_0] : memref<16x32xf32, #tpu.memory_space<vmem>>, vector<16x32xf32>
    %c0_1 = arith.constant 0 : index
    %c0_2 = arith.constant 0 : index
    %1 = vector.load %arg2[%c0_1, %c0_2] : memref<32x128xf32, #tpu.memory_space<vmem>>, vector<32x128xf32>
    %cst = arith.constant dense<0.000000e+00> : vector<16x128xf32>
    %2 = tpu.matmul %0, %1, %cst {dimension_numbers = #tpu.dot_dimension_numbers<[1], [0], [0], [1], [0, 0, 1, 1], [], []>} : vector<16x32xf32>, vector<32x128xf32>, vector<16x128xf32> -> vector<16x128xf32>
    %c0_3 = arith.constant 0 : index
    %c0_4 = arith.constant 0 : index
    %3 = vector.load %arg3[%c0_3, %c0_4] : memref<1x128xf32, #tpu.memory_space<vmem>>, vector<1x128xf32>
    %4 = vector.broadcast %3 : vector<1x128xf32> to vector<16x128xf32>
    %5 = arith.addf %2, %4 : vector<16x128xf32>
    %cst_5 = arith.constant 0.000000e+00 : f32
    %6 = vector.broadcast %cst_5 : f32 to vector<16x128xf32>
    %7 = arith.maximumf %5, %6 : vector<16x128xf32>
    %c0_6 = arith.constant 0 : index
    %c0_7 = arith.constant 0 : index
    %8 = vector.load %arg4[%c0_6, %c0_7] : memref<128x128xf32, #tpu.memory_space<vmem>>, vector<128x128xf32>
    %cst_8 = arith.constant dense<0.000000e+00> : vector<16x128xf32>
    %9 = tpu.matmul %7, %8, %cst_8 {dimension_numbers = #tpu.dot_dimension_numbers<[1], [0], [0], [1], [0, 0, 1, 1], [], []>} : vector<16x128xf32>, vector<128x128xf32>, vector<16x128xf32> -> vector<16x128xf32>
    %c0_9 = arith.constant 0 : index
    %c0_10 = arith.constant 0 : index
    %10 = vector.load %arg5[%c0_9, %c0_10] : memref<1x128xf32, #tpu.memory_space<vmem>>, vector<1x128xf32>
    %11 = vector.broadcast %10 : vector<1x128xf32> to vector<16x128xf32>
    %12 = arith.addf %9, %11 : vector<16x128xf32>
    %cst_11 = arith.constant 0.000000e+00 : f32
    %13 = vector.broadcast %cst_11 : f32 to vector<16x128xf32>
    %14 = arith.maximumf %12, %13 : vector<16x128xf32>
    %c0_12 = arith.constant 0 : index
    %c0_13 = arith.constant 0 : index
    %15 = vector.load %arg6[%c0_12, %c0_13] : memref<1x128xf32, #tpu.memory_space<vmem>>, vector<1x128xf32>
    %16 = vector.broadcast %15 : vector<1x128xf32> to vector<16x128xf32>
    %17 = arith.mulf %14, %16 : vector<16x128xf32>
    %cst_14 = arith.constant dense<0.000000e+00> : vector<16xf32>
    %18 = vector.multi_reduction <add>, %17, %cst_14 [1] : vector<16x128xf32> to vector<16xf32>
    %19 = vector.shape_cast %18 : vector<16xf32> to vector<16x1xf32>
    %20 = tpu.transpose %19, [1, 0] : vector<16x1xf32> -> vector<1x16xf32>
    %c0_15 = arith.constant 0 : index
    %c0_16 = arith.constant 0 : index
    %21 = vector.load %arg7[%c0_15, %c0_16] : memref<1x16xf32, #tpu.memory_space<vmem>>, vector<1x16xf32>
    tpu.vector_store %arg7[%c0_15, %c0_16], %20 {strides = array<i32>} : memref<1x16xf32, #tpu.memory_space<vmem>>, vector<1x16xf32>,
    return
  }
  func.func @transform_0(%arg0: i32) -> (i32, i32) {
    %c0_i32 = arith.constant 0 : i32
    %c0_i32_0 = arith.constant 0 : i32
    return %arg0, %c0_i32 : i32, i32
  }
  func.func @transform_1(%arg0: i32) -> (i32, i32) {
    %c0_i32 = arith.constant 0 : i32
    %c0_i32_0 = arith.constant 0 : i32
    %c0_i32_1 = arith.constant 0 : i32
    return %c0_i32, %c0_i32_0 : i32, i32
  }
  func.func @transform_2(%arg0: i32) -> (i32, i32) {
    %c0_i32 = arith.constant 0 : i32
    %c0_i32_0 = arith.constant 0 : i32
    %c0_i32_1 = arith.constant 0 : i32
    return %c0_i32, %c0_i32_0 : i32, i32
  }
  func.func @transform_3(%arg0: i32) -> (i32, i32) {
    %c0_i32 = arith.constant 0 : i32
    %c0_i32_0 = arith.constant 0 : i32
    %c0_i32_1 = arith.constant 0 : i32
    return %c0_i32, %c0_i32_0 : i32, i32
  }
  func.func @transform_4(%arg0: i32) -> (i32, i32) {
    %c0_i32 = arith.constant 0 : i32
    %c0_i32_0 = arith.constant 0 : i32
    %c0_i32_1 = arith.constant 0 : i32
    return %c0_i32, %c0_i32_0 : i32, i32
  }
  func.func @transform_5(%arg0: i32) -> (i32, i32) {
    %c0_i32 = arith.constant 0 : i32
    %c0_i32_0 = arith.constant 0 : i32
    %c0_i32_1 = arith.constant 0 : i32
    return %c0_i32, %c0_i32_0 : i32, i32
  }
  func.func @transform_6(%arg0: i32) -> (i32, i32) {
    %c0_i32 = arith.constant 0 : i32
    %c0_i32_0 = arith.constant 0 : i32
    return %c0_i32, %arg0 : i32, i32
  }
}

</mosaic_0001>

<bundles_post_ra>
// kernel: residual_si_head.1
= control target key start
LH: loop header
LB: loop body
LE: loop exit
PB: predicated region body
PF: predicated region fallthrough
CT: control target
= control target key end

     0   :  { %vm34_vm0 = vcmask 261120   ;;  %s336_s0 = inlined_call_operand.vmem [shape: f32[16,32], index: 0, kind: input, shape index: {}]   ;;  %s337_s1 = inlined_call_operand.vmem [shape: f32[32,128], index: 1, kind: input, shape index: {}]   ;;  %s338_s2 = inlined_call_operand.vmem [shape: f32[1,128], index: 2, kind: input, shape index: {}]   ;;  %s339_s3 = inlined_call_operand.vmem [shape: f32[128,128], index: 3, kind: input, shape index: {}]   ;;  %s340_s4 = inlined_call_operand.vmem [shape: f32[1,128], index: 4, kind: input, shape index: {}]   ;;  %s341_s5 = inlined_call_operand.vmem [shape: f32[1,128], index: 5, kind: input, shape index: {}]   ;;  %s342_s6 = inlined_call_operand.hbm [shape: f32[1,16], index: 6, kind: output, shape index: {}]  }
   0x1   :  { %v29_v0 = vld [vmem:[%s337_s1 + $0x18] sm:$0xff]  ;;  %v28_v1 = vld [vmem:[%s337_s1 + $0x10] sm:$0xff]  ;;  %v27_v2 = vld [vmem:[%s337_s1 + $0x8] sm:$0xff] }
   0x2   :  { %53 = vmatpush.msra.mxu0 %v29_v0  ;;  %v81_v3 = vld [vmem:[%s339_s3 + $0x78] sm:$0xff]  ;;  %v80_v4 = vld [vmem:[%s339_s3 + $0x70] sm:$0xff]  ;;  %v26_v5 = vld [vmem:[%s337_s1] sm:$0xff] }
   0x3   :  { %86 = vmatpush.msra.mxu1 %v81_v3  ;;  %v79_v6 = vld [vmem:[%s339_s3 + $0x68] sm:$0xff]  ;;  %173 = vmatpush.msra.mxu2 %v81_v3  ;;  %v24_v7 = vld [vmem:[%s336_s0] sm:$0xff] }
   0x4   :  { %54 = vmatpush.msra.mxu0 %v28_v1  ;;  %v78_v8 = vld [vmem:[%s339_s3 + $0x60] sm:$0xff] }
   0x5   :  { %87 = vmatpush.msra.mxu1 %v80_v4  ;;  %174 = vmatpush.msra.mxu2 %v80_v4 }
   0x6   :  { %55 = vmatpush.msra.mxu0 %v27_v2 }
   0x7   :  { %88 = vmatpush.msra.mxu1 %v79_v6 }
   0x8   :  { %56 = vmatpush.msra.mxu0 %v26_v5 }
   0x9   :  { %11 = vsyncpa [#allocation3], 0  ;;  %171 = vmatmul.msk.f32.vlgmr.msra.gmra.mxu0 %vm34_vm0, %v24_v7  ;;  %v77_v9 = vld [vmem:[%s339_s3 + $0x58] sm:$0xff]  ;;  %175 = vmatpush.msra.mxu2 %v79_v6  ;;  %v76_v10 = vld [vmem:[%s339_s3 + $0x50] sm:$0xff]  ;;  %s162_s21 = sshll.u32 %s342_s6, 4  ;;  %vm153_vm1 = vcmask 122880   ;;  %s163_s21 = int_to_ptr.hbm [resolvable:$true] %s162_s21 }
   0xa   :  { %89 = vmatpush.msra.mxu1 %v78_v8  ;;  %v75_v11 = vld [vmem:[%s339_s3 + $0x48] sm:$0xff]  ;;  %v74_v13 = vld [vmem:[%s339_s3 + $0x40] sm:$0xff]  ;;  %v73_v14 = vld [vmem:[%s339_s3 + $0x38] sm:$0xff] }
   0xb   :  { %176 = vmatpush.msra.mxu2 %v78_v8  ;;  %v25_v12 = vld [vmem:[%s336_s0 + $0x8] sm:$0xff]  ;;  %v72_v15 = vld [vmem:[%s339_s3 + $0x30] sm:$0xff]  ;;  %v70_v17 = vld [vmem:[%s339_s3 + $0x20] sm:$0xff] }
   0xc   :  { %90 = vmatpush.msra.mxu1 %v77_v9  ;;  %v71_v16 = vld [vmem:[%s339_s3 + $0x28] sm:$0xff]  ;;  %v69_v18 = vld [vmem:[%s339_s3 + $0x18] sm:$0xff]  ;;  %v68_v19 = vld [vmem:[%s339_s3 + $0x10] sm:$0xff] }
   0xd   :  { %177 = vmatpush.msra.mxu2 %v77_v9  ;;  %v67_v20 = vld [vmem:[%s339_s3 + $0x8] sm:$0xff]  ;;  %v66_v21 = vld [vmem:[%s339_s3] sm:$0xff] }
   0xe   :  { %91 = vmatpush.msra.mxu1 %v76_v10  ;;  %v191_v22 = vld [vmem:[%s338_s2] ss:$0 sm:$0xff]  ;;  %s220_s2 = smov [#allocation2]  }
   0xf   :  { %178 = vmatpush.msra.mxu2 %v76_v10  ;;  %v192_v29 = vld [vmem:[%s340_s4] ss:$0 sm:$0xff]  ;;  %s160_s4 = sshll.u32 %s220_s2, 4  ;;  %s161_s4 = int_to_ptr.vmem [resolvable:$true] %s160_s4 }
  0x10   :  { %92 = vmatpush.msra.mxu1 %v75_v11  ;;  %v193_v32 = vld [vmem:[%s341_s5] ss:$0 sm:$0xff] }
  0x11   :  { %172 = vmatmul.msk.f32.gmra.mxu0 %vm34_vm0, %v25_v12  ;;  %179 = vmatpush.msra.mxu2 %v75_v11 }
  0x12   :  { %93 = vmatpush.msra.mxu1 %v74_v13 }
  0x13   :  { %180 = vmatpush.msra.mxu2 %v74_v13 }
  0x14   :  { %94 = vmatpush.msra.mxu1 %v73_v14 }
  0x15   :  { %181 = vmatpush.msra.mxu2 %v73_v14 }
  0x16   :  { %95 = vmatpush.msra.mxu1 %v72_v15 }
  0x17   :  { %182 = vmatpush.msra.mxu2 %v72_v15 }
  0x18   :  { %96 = vmatpush.msra.mxu1 %v71_v16 }
  0x19   :  { %183 = vmatpush.msra.mxu2 %v71_v16 }
  0x1a   :  { %97 = vmatpush.msra.mxu1 %v70_v17 }
  0x1b   :  { %184 = vmatpush.msra.mxu2 %v70_v17 }
  0x1c   :  { %98 = vmatpush.msra.mxu1 %v69_v18 }
  0x1d   :  { %185 = vmatpush.msra.mxu2 %v69_v18 }
  0x1e   :  { %99 = vmatpush.msra.mxu1 %v68_v19 }
  0x1f   :  { %186 = vmatpush.msra.mxu2 %v68_v19 }
  0x20   :  { %100 = vmatpush.msra.mxu1 %v67_v20 }
  0x21   :  { %187 = vmatpush.msra.mxu2 %v67_v20 }
  0x22   :  { %101 = vmatpush.msra.mxu1 %v66_v21 }
  0x23   :  { %188 = vmatpush.msra.mxu2 %v66_v21 }
  0x86   :  { %v58_v23 = vpop.f32.mrf.mxu0 }
  0x87   :  { %v59_v24 = vadd.f32 %v191_v22, %v58_v23 }
  0x89   :  { %v64_v25 = vmax.f32 %v59_v24, 0.0 }
  0x8b   :  { %102 = vmatmul.f32.vlgmr.msra.gmra.mxu1 %v64_v25 }
  0x8e   :  { %v61_v26 = vpop.f32.mrf.mxu0 }
  0x8f   :  { %v62_v27 = vadd.f32 %v191_v22, %v61_v26 }
  0x91   :  { %v65_v28 = vmax.f32 %v62_v27, 0.0 }
  0x93   :  { %105 = vmatmul.f32.vlgmr.msra.gmra.mxu2 %v65_v28 }
 0x108   :  { %v103_v30 = vpop.f32.mrf.mxu1 }
 0x109   :  { %v104_v31 = vadd.f32 %v192_v29, %v103_v30 }
 0x10b   :  { %v109_v33 = vmax.f32 %v104_v31, 0.0 }
 0x10d   :  { %v115_v34 = vmul.f32 %v193_v32, %v109_v33 }
 0x10f   :  { %117 = vadd.xlane.f32.xlu0 %v115_v34 }
 0x116   :  { %v106_v35 = vpop.f32.mrf.mxu2 }
 0x117   :  { %v107_v36 = vadd.f32 %v192_v29, %v106_v35 }
 0x119   :  { %v110_v37 = vmax.f32 %v107_v36, 0.0 }
 0x11b   :  { %v116_v38 = vmul.f32 %v193_v32, %v110_v37 }
 0x11d   :  { %119 = vadd.xlane.f32.xlu0 %v116_v38 }
 0x182   :  { %v118_v39 = vpop.xlane.xlu0 %117 }
 0x183   :  { %121 = vxpose.xlu1.b32.start [1/2] (short) (narrow) %v118_v39, 8 }
 0x190   :  { %v120_v40 = vpop.xlane.xlu0 %119 }
 0x191   :  { %122 = vxpose.xlu1.b32.end [2/2] (short) (narrow) %v120_v40, 8 }
 0x22d   :  { %v137_v41 = vpop.trf.xlu1 }
 0x22e   :  { %154 = vst.msk [vmem:[#allocation2] sm:$0x1] %vm153_vm1, %v137_v41 }
 0x22f   :  { %165 = dma.vmem_to_hbm [thread:$0]  %s161_s4, 16, %s163_s21, [#allocation3]  }
 0x230   :  { %218 = dma.done.wait [#allocation3], 16  }
 0x231   :  { %219 = vsyncadd [#allocation3], 4294967280 }
 0x232   :  { %170 = vsyncpa [#allocation3], 1 }

</bundles_post_ra>
